<compile_context>
chip_gen: v5e
topology: v5e:2x2
jax: 0.10.0
libtpu: 0.0.40
codegen_flags: <defaults>
</compile_context>

<pallas_src>
import jax
import jax.numpy as jnp
from jax.experimental import pallas as pl
from jax.experimental.pallas import tpu as pltpu


def _dwconv_kernel(w_sm, b_sm, x_ref, o_ref):
    """One grid step: one (c_blk, H, W) channel-block of one batch image.

    w_sm : (9*C,) f32 SMEM  flattened per-channel 3x3 filters (scalar prefetch)
    b_sm : (C,)   f32 SMEM  per-channel bias (scalar prefetch)
    x_ref: (c_blk, H, W)    input block, native dtype (VMEM)
    o_ref: (c_blk, H, W)    output block (VMEM)
    """
    c_blk, H, W = x_ref.shape
    cb = pl.program_id(0)  # channel-block index -> global channel base

    def one_channel(c, carry):
        gc = cb * c_blk + c                           # global channel id
        p = x_ref[c].astype(jnp.float32)              # (H, W) plane; streamed upcast
        zrow = jnp.zeros((1, W), jnp.float32)
        zcol = jnp.zeros((H, 1), jnp.float32)
        # Row-shifted planes: rows[kh][i, j] = x[i + kh - 1, j], zero outside.
        # The zero halo is created here (VMEM only), replacing the old HBM jnp.pad.
        rows = (
            jnp.concatenate([zrow, p[:-1, :]], axis=0),   # kh = 0  (dh = -1)
            p,                                            # kh = 1
            jnp.concatenate([p[1:, :], zrow], axis=0),    # kh = 2  (dh = +1)
        )
        # Accumulator starts as the broadcast bias (saves a separate add pass).
        acc = jnp.full((H, W), b_sm[gc], jnp.float32)
        for kh in range(3):
            r = rows[kh]
            cols = (
                jnp.concatenate([zcol, r[:, :-1]], axis=1),   # kw = 0  (dw = -1)
                r,                                            # kw = 1
                jnp.concatenate([r[:, 1:], zcol], axis=1),    # kw = 2  (dw = +1)
            )
            for kw in range(3):
                # vector x sreg-scalar FMA on the VPU; weight scalar from SMEM.
                acc = acc + cols[kw] * w_sm[gc * 9 + kh * 3 + kw]
        o_ref[c] = acc.astype(o_ref.dtype)
        return carry

    if c_blk <= 8:
        jax.lax.fori_loop(0, c_blk, one_channel, 0, unroll=True)
    else:
        jax.lax.fori_loop(0, c_blk, one_channel, 0)


def dwconv(x, weight, bias, *, vmem_budget_bytes=12 * 1024 * 1024):
    """Depthwise 3x3 conv, stride 1, padding 1, groups == channels. NCHW in/out.

    x:      (B, C, H, W)   (PyTorch NCHW)
    weight: (C, 3, 3) or (C, 1, 3, 3)
    bias:   (C,)
    """
    B, C, H, W = x.shape
    w_flat = jnp.asarray(weight, jnp.float32).reshape(C * 9)   # -> SMEM scalars
    b_flat = jnp.asarray(bias, jnp.float32).reshape(C)

    # Channel-block auto-sizing: double-buffered (input + output) blocks must fit the
    # scoped-VMEM budget -> works for realistic H, W without vmem_limit overrides.
    itemsize = jnp.dtype(x.dtype).itemsize
    per_chan_bytes = 4 * H * W * itemsize            # (in + out) x 2 pipeline buffers
    c_max = max(1, vmem_budget_bytes // per_chan_bytes)
    if B == 1 and C > 1:
        # v7x has 2 TensorCores: guarantee >= 2 "parallel" grid steps.
        c_max = min(c_max, max(1, C // 2))
    c_blk = 1
    for d in range(1, C + 1):                        # largest divisor of C <= c_max
        if C % d == 0 and d <= c_max:
            c_blk = d
    n_cblk = C // c_blk

    grid = (n_cblk, B)   # fully independent blocks -> both axes "parallel"

    cost = pl.CostEstimate(
        flops=18 * B * C * H * W,                    # 9 mul + 9 add per element
        transcendentals=0,
        bytes_accessed=2 * B * C * H * W * itemsize + 9 * C * 4 + C * 4,
    )

    return pl.pallas_call(
        _dwconv_kernel,
        out_shape=jax.ShapeDtypeStruct((B, C, H, W), x.dtype),
        grid_spec=pltpu.PrefetchScalarGridSpec(
            num_scalar_prefetch=2,                   # w_flat, b_flat -> SMEM
            grid=grid,
            in_specs=[
                pl.BlockSpec((None, c_blk, H, W),
                             lambda c, b, w_sm, b_sm: (b, c, 0, 0)),
            ],
            out_specs=pl.BlockSpec((None, c_blk, H, W),
                                   lambda c, b, w_sm, b_sm: (b, c, 0, 0)),
        ),
        compiler_params=pltpu.CompilerParams(
            dimension_semantics=("parallel", "parallel")),
        cost_estimate=cost,
    )(w_flat, b_flat, x)


def dwconv_ref(x, weight, bias):
    """Pure-JAX reference: depthwise conv via lax.conv_general_dilated."""
    C = x.shape[1]
    w = jnp.asarray(weight, x.dtype).reshape(C, 1, 3, 3)  # (out=C, in/groups=1, kh, kw)
    y = jax.lax.conv_general_dilated(
        x, w, window_strides=(1, 1), padding=((1, 1), (1, 1)),
        dimension_numbers=("NCHW", "OIHW", "NCHW"),
        feature_group_count=C,
        precision=jax.lax.Precision.HIGHEST)
    return y + bias.reshape(1, C, 1, 1)


if __name__ == "__main__":
    key = jax.random.PRNGKey(0)
    kx, kw, kb = jax.random.split(key, 3)

    B, C, H, W = 2, 4, 16, 16
    x = jax.random.normal(kx, (B, C, H, W), dtype=jnp.float32)
    # nn.Conv2d(dim, dim, 3, 1, 1, bias=True, groups=dim):
    # weight (C,1,3,3) stored squeezed as (C,3,3); bias (C,)
    weight = 0.1 * jax.random.normal(kw, (C, 3, 3), dtype=jnp.float32)
    bias = 0.1 * jax.random.normal(kb, (C,), dtype=jnp.float32)

    out = dwconv(x, weight, bias)
    out = jax.block_until_ready(out)

    ref = dwconv_ref(x, weight, bias)
    assert out.shape == (B, C, H, W)
    assert jnp.allclose(out, ref, atol=1e-5, rtol=1e-5), "mismatch vs reference"

    print("KERNEL_OK")
</pallas_src>

<mosaic_0001>
module attributes {stable_mosaic.version = 11 : i64} {
  func.func @_dwconv_kernel(%arg0: i32, %arg1: i32, %arg2: memref<36xf32, #tpu.memory_space<smem>>, %arg3: memref<4xf32, #tpu.memory_space<smem>>, %arg4: memref<1x4x16x16xf32, #tpu.memory_space<vmem>>, %arg5: memref<1x4x16x16xf32, #tpu.memory_space<vmem>>) attributes {dimension_semantics = [#tpu.dimension_semantics<parallel>, #tpu.dimension_semantics<parallel>], iteration_bounds = array<i64: 1, 2>, scalar_prefetch = 2 : i64, scratch_operands = 0 : i64, tpu.core_type = #tpu.core_type<tc>, window_params = [{transform_indices = @transform_0, window_bounds = array<i64: 1, 4, 16, 16>}, {transform_indices = @transform_1, window_bounds = array<i64: 1, 4, 16, 16>}]} {
    %c0_i32 = arith.constant 0 : i32
    %c4_i32 = arith.constant 4 : i32
    %0 = arith.muli %arg0, %c4_i32 : i32
    %1 = arith.addi %0, %c0_i32 : i32
    %c0 = arith.constant 0 : index
    %2 = arith.index_cast %c0_i32 : i32 to index
    %c0_0 = arith.constant 0 : index
    %c0_1 = arith.constant 0 : index
    %3 = vector.load %arg4[%c0, %2, %c0_0, %c0_1] : memref<1x4x16x16xf32, #tpu.memory_space<vmem>>, vector<1x1x16x16xf32>
    %4 = vector.shape_cast %3 : vector<1x1x16x16xf32> to vector<16x16xf32>
    %cst = arith.constant 0.000000e+00 : f32
    %5 = vector.broadcast %cst : f32 to vector<1x16xf32>
    %cst_2 = arith.constant 0.000000e+00 : f32
    %6 = vector.broadcast %cst_2 : f32 to vector<16x1xf32>
    %7 = vector.extract_strided_slice %4 {offsets = [0, 0], sizes = [15, 16], strides = [1, 1]} : vector<16x16xf32> to vector<15x16xf32>
    %8 = tpu.concatenate %5, %7 in 0 : vector<1x16xf32>, vector<15x16xf32> -> vector<16x16xf32>
    %9 = vector.extract_strided_slice %4 {offsets = [1, 0], sizes = [15, 16], strides = [1, 1]} : vector<16x16xf32> to vector<15x16xf32>
    %10 = tpu.concatenate %9, %5 in 0 : vector<15x16xf32>, vector<1x16xf32> -> vector<16x16xf32>
    %11 = arith.index_cast %1 : i32 to index
    %12 = memref.load %arg3[%11] : memref<4xf32, #tpu.memory_space<smem>>
    %13 = vector.broadcast %12 : f32 to vector<16x16xf32>
    %14 = vector.extract_strided_slice %8 {offsets = [0, 0], sizes = [16, 15], strides = [1, 1]} : vector<16x16xf32> to vector<16x15xf32>
    %15 = tpu.concatenate %6, %14 in 1 : vector<16x1xf32>, vector<16x15xf32> -> vector<16x16xf32>
    %16 = vector.extract_strided_slice %8 {offsets = [0, 1], sizes = [16, 15], strides = [1, 1]} : vector<16x16xf32> to vector<16x15xf32>
    %17 = tpu.concatenate %16, %6 in 1 : vector<16x15xf32>, vector<16x1xf32> -> vector<16x16xf32>
    %c9_i32 = arith.constant 9 : i32
    %18 = arith.muli %1, %c9_i32 : i32
    %c0_i32_3 = arith.constant 0 : i32
    %19 = arith.addi %18, %c0_i32_3 : i32
    %c0_i32_4 = arith.constant 0 : i32
    %20 = arith.addi %19, %c0_i32_4 : i32
    %21 = arith.index_cast %20 : i32 to index
    %22 = memref.load %arg2[%21] : memref<36xf32, #tpu.memory_space<smem>>
    %23 = vector.broadcast %22 : f32 to vector<16x16xf32>
    %24 = arith.mulf %15, %23 : vector<16x16xf32>
    %25 = arith.addf %13, %24 : vector<16x16xf32>
    %c9_i32_5 = arith.constant 9 : i32
    %26 = arith.muli %1, %c9_i32_5 : i32
    %c0_i32_6 = arith.constant 0 : i32
    %27 = arith.addi %26, %c0_i32_6 : i32
    %c1_i32 = arith.constant 1 : i32
    %28 = arith.addi %27, %c1_i32 : i32
    %29 = arith.index_cast %28 : i32 to index
    %30 = memref.load %arg2[%29] : memref<36xf32, #tpu.memory_space<smem>>
    %31 = vector.broadcast %30 : f32 to vector<16x16xf32>
    %32 = arith.mulf %8, %31 : vector<16x16xf32>
    %33 = arith.addf %25, %32 : vector<16x16xf32>
    %c9_i32_7 = arith.constant 9 : i32
    %34 = arith.muli %1, %c9_i32_7 : i32
    %c0_i32_8 = arith.constant 0 : i32
    %35 = arith.addi %34, %c0_i32_8 : i32
    %c2_i32 = arith.constant 2 : i32
    %36 = arith.addi %35, %c2_i32 : i32
    %37 = arith.index_cast %36 : i32 to index
    %38 = memref.load %arg2[%37] : memref<36xf32, #tpu.memory_space<smem>>
    %39 = vector.broadcast %38 : f32 to vector<16x16xf32>
    %40 = arith.mulf %17, %39 : vector<16x16xf32>
    %41 = arith.addf %33, %40 : vector<16x16xf32>
    %42 = vector.extract_strided_slice %4 {offsets = [0, 0], sizes = [16, 15], strides = [1, 1]} : vector<16x16xf32> to vector<16x15xf32>
    %43 = tpu.concatenate %6, %42 in 1 : vector<16x1xf32>, vector<16x15xf32> -> vector<16x16xf32>
    %44 = vector.extract_strided_slice %4 {offsets = [0, 1], sizes = [16, 15], strides = [1, 1]} : vector<16x16xf32> to vector<16x15xf32>
    %45 = tpu.concatenate %44, %6 in 1 : vector<16x15xf32>, vector<16x1xf32> -> vector<16x16xf32>
    %c9_i32_9 = arith.constant 9 : i32
    %46 = arith.muli %1, %c9_i32_9 : i32
    %c3_i32 = arith.constant 3 : i32
    %47 = arith.addi %46, %c3_i32 : i32
    %c0_i32_10 = arith.constant 0 : i32
    %48 = arith.addi %47, %c0_i32_10 : i32
    %49 = arith.index_cast %48 : i32 to index
    %50 = memref.load %arg2[%49] : memref<36xf32, #tpu.memory_space<smem>>
    %51 = vector.broadcast %50 : f32 to vector<16x16xf32>
    %52 = arith.mulf %43, %51 : vector<16x16xf32>
    %53 = arith.addf %41, %52 : vector<16x16xf32>
    %c9_i32_11 = arith.constant 9 : i32
    %54 = arith.muli %1, %c9_i32_11 : i32
    %c3_i32_12 = arith.constant 3 : i32
    %55 = arith.addi %54, %c3_i32_12 : i32
    %c1_i32_13 = arith.constant 1 : i32
    %56 = arith.addi %55, %c1_i32_13 : i32
    %57 = arith.index_cast %56 : i32 to index
    %58 = memref.load %arg2[%57] : memref<36xf32, #tpu.memory_space<smem>>
    %59 = vector.broadcast %58 : f32 to vector<16x16xf32>
    %60 = arith.mulf %4, %59 : vector<16x16xf32>
    %61 = arith.addf %53, %60 : vector<16x16xf32>
    %c9_i32_14 = arith.constant 9 : i32
    %62 = arith.muli %1, %c9_i32_14 : i32
    %c3_i32_15 = arith.constant 3 : i32
    %63 = arith.addi %62, %c3_i32_15 : i32
    %c2_i32_16 = arith.constant 2 : i32
    %64 = arith.addi %63, %c2_i32_16 : i32
    %65 = arith.index_cast %64 : i32 to index
    %66 = memref.load %arg2[%65] : memref<36xf32, #tpu.memory_space<smem>>
    %67 = vector.broadcast %66 : f32 to vector<16x16xf32>
    %68 = arith.mulf %45, %67 : vector<16x16xf32>
    %69 = arith.addf %61, %68 : vector<16x16xf32>
    %70 = vector.extract_strided_slice %10 {offsets = [0, 0], sizes = [16, 15], strides = [1, 1]} : vector<16x16xf32> to vector<16x15xf32>
    %71 = tpu.concatenate %6, %70 in 1 : vector<16x1xf32>, vector<16x15xf32> -> vector<16x16xf32>
    %72 = vector.extract_strided_slice %10 {offsets = [0, 1], sizes = [16, 15], strides = [1, 1]} : vector<16x16xf32> to vector<16x15xf32>
    %73 = tpu.concatenate %72, %6 in 1 : vector<16x15xf32>, vector<16x1xf32> -> vector<16x16xf32>
    %c9_i32_17 = arith.constant 9 : i32
    %74 = arith.muli %1, %c9_i32_17 : i32
    %c6_i32 = arith.constant 6 : i32
    %75 = arith.addi %74, %c6_i32 : i32
    %c0_i32_18 = arith.constant 0 : i32
    %76 = arith.addi %75, %c0_i32_18 : i32
    %77 = arith.index_cast %76 : i32 to index
    %78 = memref.load %arg2[%77] : memref<36xf32, #tpu.memory_space<smem>>
    %79 = vector.broadcast %78 : f32 to vector<16x16xf32>
    %80 = arith.mulf %71, %79 : vector<16x16xf32>
    %81 = arith.addf %69, %80 : vector<16x16xf32>
    %c9_i32_19 = arith.constant 9 : i32
    %82 = arith.muli %1, %c9_i32_19 : i32
    %c6_i32_20 = arith.constant 6 : i32
    %83 = arith.addi %82, %c6_i32_20 : i32
    %c1_i32_21 = arith.constant 1 : i32
    %84 = arith.addi %83, %c1_i32_21 : i32
    %85 = arith.index_cast %84 : i32 to index
    %86 = memref.load %arg2[%85] : memref<36xf32, #tpu.memory_space<smem>>
    %87 = vector.broadcast %86 : f32 to vector<16x16xf32>
    %88 = arith.mulf %10, %87 : vector<16x16xf32>
    %89 = arith.addf %81, %88 : vector<16x16xf32>
    %c9_i32_22 = arith.constant 9 : i32
    %90 = arith.muli %1, %c9_i32_22 : i32
    %c6_i32_23 = arith.constant 6 : i32
    %91 = arith.addi %90, %c6_i32_23 : i32
    %c2_i32_24 = arith.constant 2 : i32
    %92 = arith.addi %91, %c2_i32_24 : i32
    %93 = arith.index_cast %92 : i32 to index
    %94 = memref.load %arg2[%93] : memref<36xf32, #tpu.memory_space<smem>>
    %95 = vector.broadcast %94 : f32 to vector<16x16xf32>
    %96 = arith.mulf %73, %95 : vector<16x16xf32>
    %97 = arith.addf %89, %96 : vector<16x16xf32>
    %c0_25 = arith.constant 0 : index
    %98 = arith.index_cast %c0_i32 : i32 to index
    %c0_26 = arith.constant 0 : index
    %c0_27 = arith.constant 0 : index
    %99 = vector.load %arg5[%c0_25, %98, %c0_26, %c0_27] : memref<1x4x16x16xf32, #tpu.memory_space<vmem>>, vector<1x1x16x16xf32>
    %100 = vector.shape_cast %99 : vector<1x1x16x16xf32> to vector<16x16xf32>
    %101 = vector.shape_cast %97 : vector<16x16xf32> to vector<1x1x16x16xf32>
    tpu.vector_store %arg5[%c0_25, %98, %c0_26, %c0_27], %101 {strides = array<i32>} : memref<1x4x16x16xf32, #tpu.memory_space<vmem>>, vector<1x1x16x16xf32>,
    %c1_i32_28 = arith.constant 1 : i32
    %c4_i32_29 = arith.constant 4 : i32
    %102 = arith.muli %arg0, %c4_i32_29 : i32
    %103 = arith.addi %102, %c1_i32_28 : i32
    %c0_30 = arith.constant 0 : index
    %104 = arith.index_cast %c1_i32_28 : i32 to index
    %c0_31 = arith.constant 0 : index
    %c0_32 = arith.constant 0 : index
    %105 = vector.load %arg4[%c0_30, %104, %c0_31, %c0_32] : memref<1x4x16x16xf32, #tpu.memory_space<vmem>>, vector<1x1x16x16xf32>
    %106 = vector.shape_cast %105 : vector<1x1x16x16xf32> to vector<16x16xf32>
    %cst_33 = arith.constant 0.000000e+00 : f32
    %107 = vector.broadcast %cst_33 : f32 to vector<1x16xf32>
    %cst_34 = arith.constant 0.000000e+00 : f32
    %108 = vector.broadcast %cst_34 : f32 to vector<16x1xf32>
    %109 = vector.extract_strided_slice %106 {offsets = [0, 0], sizes = [15, 16], strides = [1, 1]} : vector<16x16xf32> to vector<15x16xf32>
    %110 = tpu.concatenate %107, %109 in 0 : vector<1x16xf32>, vector<15x16xf32> -> vector<16x16xf32>
    %111 = vector.extract_strided_slice %106 {offsets = [1, 0], sizes = [15, 16], strides = [1, 1]} : vector<16x16xf32> to vector<15x16xf32>
    %112 = tpu.concatenate %111, %107 in 0 : vector<15x16xf32>, vector<1x16xf32> -> vector<16x16xf32>
    %113 = arith.index_cast %103 : i32 to index
    %114 = memref.load %arg3[%113] : memref<4xf32, #tpu.memory_space<smem>>
    %115 = vector.broadcast %114 : f32 to vector<16x16xf32>
    %116 = vector.extract_strided_slice %110 {offsets = [0, 0], sizes = [16, 15], strides = [1, 1]} : vector<16x16xf32> to vector<16x15xf32>
    %117 = tpu.concatenate %108, %116 in 1 : vector<16x1xf32>, vector<16x15xf32> -> vector<16x16xf32>
    %118 = vector.extract_strided_slice %110 {offsets = [0, 1], sizes = [16, 15], strides = [1, 1]} : vector<16x16xf32> to vector<16x15xf32>
    %119 = tpu.concatenate %118, %108 in 1 : vector<16x15xf32>, vector<16x1xf32> -> vector<16x16xf32>
    %c9_i32_35 = arith.constant 9 : i32
    %120 = arith.muli %103, %c9_i32_35 : i32
    %c0_i32_36 = arith.constant 0 : i32
    %121 = arith.addi %120, %c0_i32_36 : i32
    %c0_i32_37 = arith.constant 0 : i32
    %122 = arith.addi %121, %c0_i32_37 : i32
    %123 = arith.index_cast %122 : i32 to index
    %124 = memref.load %arg2[%123] : memref<36xf32, #tpu.memory_space<smem>>
    %125 = vector.broadcast %124 : f32 to vector<16x16xf32>
    %126 = arith.mulf %117, %125 : vector<16x16xf32>
    %127 = arith.addf %115, %126 : vector<16x16xf32>
    %c9_i32_38 = arith.constant 9 : i32
    %128 = arith.muli %103, %c9_i32_38 : i32
    %c0_i32_39 = arith.constant 0 : i32
    %129 = arith.addi %128, %c0_i32_39 : i32
    %c1_i32_40 = arith.constant 1 : i32
    %130 = arith.addi %129, %c1_i32_40 : i32
    %131 = arith.index_cast %130 : i32 to index
    %132 = memref.load %arg2[%131] : memref<36xf32, #tpu.memory_space<smem>>
    %133 = vector.broadcast %132 : f32 to vector<16x16xf32>
    %134 = arith.mulf %110, %133 : vector<16x16xf32>
    %135 = arith.addf %127, %134 : vector<16x16xf32>
    %c9_i32_41 = arith.constant 9 : i32
    %136 = arith.muli %103, %c9_i32_41 : i32
    %c0_i32_42 = arith.constant 0 : i32
    %137 = arith.addi %136, %c0_i32_42 : i32
    %c2_i32_43 = arith.constant 2 : i32
    %138 = arith.addi %137, %c2_i32_43 : i32
    %139 = arith.index_cast %138 : i32 to index
    %140 = memref.load %arg2[%139] : memref<36xf32, #tpu.memory_space<smem>>
    %141 = vector.broadcast %140 : f32 to vector<16x16xf32>
    %142 = arith.mulf %119, %141 : vector<16x16xf32>
    %143 = arith.addf %135, %142 : vector<16x16xf32>
    %144 = vector.extract_strided_slice %106 {offsets = [0, 0], sizes = [16, 15], strides = [1, 1]} : vector<16x16xf32> to vector<16x15xf32>
    %145 = tpu.concatenate %108, %144 in 1 : vector<16x1xf32>, vector<16x15xf32> -> vector<16x16xf32>
    %146 = vector.extract_strided_slice %106 {offsets = [0, 1], sizes = [16, 15], strides = [1, 1]} : vector<16x16xf32> to vector<16x15xf32>
    %147 = tpu.concatenate %146, %108 in 1 : vector<16x15xf32>, vector<16x1xf32> -> vector<16x16xf32>
    %c9_i32_44 = arith.constant 9 : i32
    %148 = arith.muli %103, %c9_i32_44 : i32
    %c3_i32_45 = arith.constant 3 : i32
    %149 = arith.addi %148, %c3_i32_45 : i32
    %c0_i32_46 = arith.constant 0 : i32
    %150 = arith.addi %149, %c0_i32_46 : i32
    %151 = arith.index_cast %150 : i32 to index
    %152 = memref.load %arg2[%151] : memref<36xf32, #tpu.memory_space<smem>>
    %153 = vector.broadcast %152 : f32 to vector<16x16xf32>
    %154 = arith.mulf %145, %153 : vector<16x16xf32>
    %155 = arith.addf %143, %154 : vector<16x16xf32>
    %c9_i32_47 = arith.constant 9 : i32
    %156 = arith.muli %103, %c9_i32_47 : i32
    %c3_i32_48 = arith.constant 3 : i32
    %157 = arith.addi %156, %c3_i32_48 : i32
    %c1_i32_49 = arith.constant 1 : i32
    %158 = arith.addi %157, %c1_i32_49 : i32
    %159 = arith.index_cast %158 : i32 to index
    %160 = memref.load %arg2[%159] : memref<36xf32, #tpu.memory_space<smem>>
    %161 = vector.broadcast %160 : f32 to vector<16x16xf32>
    %162 = arith.mulf %106, %161 : vector<16x16xf32>
    %163 = arith.addf %155, %162 : vector<16x16xf32>
    %c9_i32_50 = arith.constant 9 : i32
    %164 = arith.muli %103, %c9_i32_50 : i32
    %c3_i32_51 = arith.constant 3 : i32
    %165 = arith.addi %164, %c3_i32_51 : i32
    %c2_i32_52 = arith.constant 2 : i32
    %166 = arith.addi %165, %c2_i32_52 : i32
    %167 = arith.index_cast %166 : i32 to index
    %168 = memref.load %arg2[%167] : memref<36xf32, #tpu.memory_space<smem>>
    %169 = vector.broadcast %168 : f32 to vector<16x16xf32>
    %170 = arith.mulf %147, %169 : vector<16x16xf32>
    %171 = arith.addf %163, %170 : vector<16x16xf32>
    %172 = vector.extract_strided_slice %112 {offsets = [0, 0], sizes = [16, 15], strides = [1, 1]} : vector<16x16xf32> to vector<16x15xf32>
    %173 = tpu.concatenate %108, %172 in 1 : vector<16x1xf32>, vector<16x15xf32> -> vector<16x16xf32>
    %174 = vector.extract_strided_slice %112 {offsets = [0, 1], sizes = [16, 15], strides = [1, 1]} : vector<16x16xf32> to vector<16x15xf32>
    %175 = tpu.concatenate %174, %108 in 1 : vector<16x15xf32>, vector<16x1xf32> -> vector<16x16xf32>
    %c9_i32_53 = arith.constant 9 : i32
    %176 = arith.muli %103, %c9_i32_53 : i32
    %c6_i32_54 = arith.constant 6 : i32
    %177 = arith.addi %176, %c6_i32_54 : i32
    %c0_i32_55 = arith.constant 0 : i32
    %178 = arith.addi %177, %c0_i32_55 : i32
    %179 = arith.index_cast %178 : i32 to index
    %180 = memref.load %arg2[%179] : memref<36xf32, #tpu.memory_space<smem>>
    %181 = vector.broadcast %180 : f32 to vector<16x16xf32>
    %182 = arith.mulf %173, %181 : vector<16x16xf32>
    %183 = arith.addf %171, %182 : vector<16x16xf32>
    %c9_i32_56 = arith.constant 9 : i32
    %184 = arith.muli %103, %c9_i32_56 : i32
    %c6_i32_57 = arith.constant 6 : i32
    %185 = arith.addi %184, %c6_i32_57 : i32
    %c1_i32_58 = arith.constant 1 : i32
    %186 = arith.addi %185, %c1_i32_58 : i32
    %187 = arith.index_cast %186 : i32 to index
    %188 = memref.load %arg2[%187] : memref<36xf32, #tpu.memory_space<smem>>
    %189 = vector.broadcast %188 : f32 to vector<16x16xf32>
    %190 = arith.mulf %112, %189 : vector<16x16xf32>
    %191 = arith.addf %183, %190 : vector<16x16xf32>
    %c9_i32_59 = arith.constant 9 : i32
    %192 = arith.muli %103, %c9_i32_59 : i32
    %c6_i32_60 = arith.constant 6 : i32
    %193 = arith.addi %192, %c6_i32_60 : i32
    %c2_i32_61 = arith.constant 2 : i32
    %194 = arith.addi %193, %c2_i32_61 : i32
    %195 = arith.index_cast %194 : i32 to index
    %196 = memref.load %arg2[%195] : memref<36xf32, #tpu.memory_space<smem>>
    %197 = vector.broadcast %196 : f32 to vector<16x16xf32>
    %198 = arith.mulf %175, %197 : vector<16x16xf32>
    %199 = arith.addf %191, %198 : vector<16x16xf32>
    %c0_62 = arith.constant 0 : index
    %200 = arith.index_cast %c1_i32_28 : i32 to index
    %c0_63 = arith.constant 0 : index
    %c0_64 = arith.constant 0 : index
    %201 = vector.load %arg5[%c0_62, %200, %c0_63, %c0_64] : memref<1x4x16x16xf32, #tpu.memory_space<vmem>>, vector<1x1x16x16xf32>
    %202 = vector.shape_cast %201 : vector<1x1x16x16xf32> to vector<16x16xf32>
    %203 = vector.shape_cast %199 : vector<16x16xf32> to vector<1x1x16x16xf32>
    tpu.vector_store %arg5[%c0_62, %200, %c0_63, %c0_64], %203 {strides = array<i32>} : memref<1x4x16x16xf32, #tpu.memory_space<vmem>>, vector<1x1x16x16xf32>,
    %c2_i32_65 = arith.constant 2 : i32
    %c4_i32_66 = arith.constant 4 : i32
    %204 = arith.muli %arg0, %c4_i32_66 : i32
    %205 = arith.addi %204, %c2_i32_65 : i32
    %c0_67 = arith.constant 0 : index
    %206 = arith.index_cast %c2_i32_65 : i32 to index
    %c0_68 = arith.constant 0 : index
    %c0_69 = arith.constant 0 : index
    %207 = vector.load %arg4[%c0_67, %206, %c0_68, %c0_69] : memref<1x4x16x16xf32, #tpu.memory_space<vmem>>, vector<1x1x16x16xf32>
    %208 = vector.shape_cast %207 : vector<1x1x16x16xf32> to vector<16x16xf32>
    %cst_70 = arith.constant 0.000000e+00 : f32
    %209 = vector.broadcast %cst_70 : f32 to vector<1x16xf32>
    %cst_71 = arith.constant 0.000000e+00 : f32
    %210 = vector.broadcast %cst_71 : f32 to vector<16x1xf32>
    %211 = vector.extract_strided_slice %208 {offsets = [0, 0], sizes = [15, 16], strides = [1, 1]} : vector<16x16xf32> to vector<15x16xf32>
    %212 = tpu.concatenate %209, %211 in 0 : vector<1x16xf32>, vector<15x16xf32> -> vector<16x16xf32>
    %213 = vector.extract_strided_slice %208 {offsets = [1, 0], sizes = [15, 16], strides = [1, 1]} : vector<16x16xf32> to vector<15x16xf32>
    %214 = tpu.concatenate %213, %209 in 0 : vector<15x16xf32>, vector<1x16xf32> -> vector<16x16xf32>
    %215 = arith.index_cast %205 : i32 to index
    %216 = memref.load %arg3[%215] : memref<4xf32, #tpu.memory_space<smem>>
    %217 = vector.broadcast %216 : f32 to vector<16x16xf32>
    %218 = vector.extract_strided_slice %212 {offsets = [0, 0], sizes = [16, 15], strides = [1, 1]} : vector<16x16xf32> to vector<16x15xf32>
    %219 = tpu.concatenate %210, %218 in 1 : vector<16x1xf32>, vector<16x15xf32> -> vector<16x16xf32>
    %220 = vector.extract_strided_slice %212 {offsets = [0, 1], sizes = [16, 15], strides = [1, 1]} : vector<16x16xf32> to vector<16x15xf32>
    %221 = tpu.concatenate %220, %210 in 1 : vector<16x15xf32>, vector<16x1xf32> -> vector<16x16xf32>
    %c9_i32_72 = arith.constant 9 : i32
    %222 = arith.muli %205, %c9_i32_72 : i32
    %c0_i32_73 = arith.constant 0 : i32
    %223 = arith.addi %222, %c0_i32_73 : i32
    %c0_i32_74 = arith.constant 0 : i32
    %224 = arith.addi %223, %c0_i32_74 : i32
    %225 = arith.index_cast %224 : i32 to index
    %226 = memref.load %arg2[%225] : memref<36xf32, #tpu.memory_space<smem>>
    %227 = vector.broadcast %226 : f32 to vector<16x16xf32>
    %228 = arith.mulf %219, %227 : vector<16x16xf32>
    %229 = arith.addf %217, %228 : vector<16x16xf32>
    %c9_i32_75 = arith.constant 9 : i32
    %230 = arith.muli %205, %c9_i32_75 : i32
    %c0_i32_76 = arith.constant 0 : i32
    %231 = arith.addi %230, %c0_i32_76 : i32
    %c1_i32_77 = arith.constant 1 : i32
    %232 = arith.addi %231, %c1_i32_77 : i32
    %233 = arith.index_cast %232 : i32 to index
    %234 = memref.load %arg2[%233] : memref<36xf32, #tpu.memory_space<smem>>
    %235 = vector.broadcast %234 : f32 to vector<16x16xf32>
    %236 = arith.mulf %212, %235 : vector<16x16xf32>
    %237 = arith.addf %229, %236 : vector<16x16xf32>
    %c9_i32_78 = arith.constant 9 : i32
    %238 = arith.muli %205, %c9_i32_78 : i32
    %c0_i32_79 = arith.constant 0 : i32
    %239 = arith.addi %238, %c0_i32_79 : i32
    %c2_i32_80 = arith.constant 2 : i32
    %240 = arith.addi %239, %c2_i32_80 : i32
    %241 = arith.index_cast %240 : i32 to index
    %242 = memref.load %arg2[%241] : memref<36xf32, #tpu.memory_space<smem>>
    %243 = vector.broadcast %242 : f32 to vector<16x16xf32>
    %244 = arith.mulf %221, %243 : vector<16x16xf32>
    %245 = arith.addf %237, %244 : vector<16x16xf32>
    %246 = vector.extract_strided_slice %208 {offsets = [0, 0], sizes = [16, 15], strides = [1, 1]} : vector<16x16xf32> to vector<16x15xf32>
    %247 = tpu.concatenate %210, %246 in 1 : vector<16x1xf32>, vector<16x15xf32> -> vector<16x16xf32>
    %248 = vector.extract_strided_slice %208 {offsets = [0, 1], sizes = [16, 15], strides = [1, 1]} : vector<16x16xf32> to vector<16x15xf32>
    %249 = tpu.concatenate %248, %210 in 1 : vector<16x15xf32>, vector<16x1xf32> -> vector<16x16xf32>
    %c9_i32_81 = arith.constant 9 : i32
    %250 = arith.muli %205, %c9_i32_81 : i32
    %c3_i32_82 = arith.constant 3 : i32
    %251 = arith.addi %250, %c3_i32_82 : i32
    %c0_i32_83 = arith.constant 0 : i32
    %252 = arith.addi %251, %c0_i32_83 : i32
    %253 = arith.index_cast %252 : i32 to index
    %254 = memref.load %arg2[%253] : memref<36xf32, #tpu.memory_space<smem>>
    %255 = vector.broadcast %254 : f32 to vector<16x16xf32>
    %256 = arith.mulf %247, %255 : vector<16x16xf32>
    %257 = arith.addf %245, %256 : vector<16x16xf32>
    %c9_i32_84 = arith.constant 9 : i32
    %258 = arith.muli %205, %c9_i32_84 : i32
    %c3_i32_85 = arith.constant 3 : i32
    %259 = arith.addi %258, %c3_i32_85 : i32
    %c1_i32_86 = arith.constant 1 : i32
    %260 = arith.addi %259, %c1_i32_86 : i32
    %261 = arith.index_cast %260 : i32 to index
    %262 = memref.load %arg2[%261] : memref<36xf32, #tpu.memory_space<smem>>
    %263 = vector.broadcast %262 : f32 to vector<16x16xf32>
    %264 = arith.mulf %208, %263 : vector<16x16xf32>
    %265 = arith.addf %257, %264 : vector<16x16xf32>
    %c9_i32_87 = arith.constant 9 : i32
    %266 = arith.muli %205, %c9_i32_87 : i32
    %c3_i32_88 = arith.constant 3 : i32
    %267 = arith.addi %266, %c3_i32_88 : i32
    %c2_i32_89 = arith.constant 2 : i32
    %268 = arith.addi %267, %c2_i32_89 : i32
    %269 = arith.index_cast %268 : i32 to index
    %270 = memref.load %arg2[%269] : memref<36xf32, #tpu.memory_space<smem>>
    %271 = vector.broadcast %270 : f32 to vector<16x16xf32>
    %272 = arith.mulf %249, %271 : vector<16x16xf32>
    %273 = arith.addf %265, %272 : vector<16x16xf32>
    %274 = vector.extract_strided_slice %214 {offsets = [0, 0], sizes = [16, 15], strides = [1, 1]} : vector<16x16xf32> to vector<16x15xf32>
    %275 = tpu.concatenate %210, %274 in 1 : vector<16x1xf32>, vector<16x15xf32> -> vector<16x16xf32>
    %276 = vector.extract_strided_slice %214 {offsets = [0, 1], sizes = [16, 15], strides = [1, 1]} : vector<16x16xf32> to vector<16x15xf32>
    %277 = tpu.concatenate %276, %210 in 1 : vector<16x15xf32>, vector<16x1xf32> -> vector<16x16xf32>
    %c9_i32_90 = arith.constant 9 : i32
    %278 = arith.muli %205, %c9_i32_90 : i32
    %c6_i32_91 = arith.constant 6 : i32
    %279 = arith.addi %278, %c6_i32_91 : i32
    %c0_i32_92 = arith.constant 0 : i32
    %280 = arith.addi %279, %c0_i32_92 : i32
    %281 = arith.index_cast %280 : i32 to index
    %282 = memref.load %arg2[%281] : memref<36xf32, #tpu.memory_space<smem>>
    %283 = vector.broadcast %282 : f32 to vector<16x16xf32>
    %284 = arith.mulf %275, %283 : vector<16x16xf32>
    %285 = arith.addf %273, %284 : vector<16x16xf32>
    %c9_i32_93 = arith.constant 9 : i32
    %286 = arith.muli %205, %c9_i32_93 : i32
    %c6_i32_94 = arith.constant 6 : i32
    %287 = arith.addi %286, %c6_i32_94 : i32
    %c1_i32_95 = arith.constant 1 : i32
    %288 = arith.addi %287, %c1_i32_95 : i32
    %289 = arith.index_cast %288 : i32 to index
    %290 = memref.load %arg2[%289] : memref<36xf32, #tpu.memory_space<smem>>
    %291 = vector.broadcast %290 : f32 to vector<16x16xf32>
    %292 = arith.mulf %214, %291 : vector<16x16xf32>
    %293 = arith.addf %285, %292 : vector<16x16xf32>
    %c9_i32_96 = arith.constant 9 : i32
    %294 = arith.muli %205, %c9_i32_96 : i32
    %c6_i32_97 = arith.constant 6 : i32
    %295 = arith.addi %294, %c6_i32_97 : i32
    %c2_i32_98 = arith.constant 2 : i32
    %296 = arith.addi %295, %c2_i32_98 : i32
    %297 = arith.index_cast %296 : i32 to index
    %298 = memref.load %arg2[%297] : memref<36xf32, #tpu.memory_space<smem>>
    %299 = vector.broadcast %298 : f32 to vector<16x16xf32>
    %300 = arith.mulf %277, %299 : vector<16x16xf32>
    %301 = arith.addf %293, %300 : vector<16x16xf32>
    %c0_99 = arith.constant 0 : index
    %302 = arith.index_cast %c2_i32_65 : i32 to index
    %c0_100 = arith.constant 0 : index
    %c0_101 = arith.constant 0 : index
    %303 = vector.load %arg5[%c0_99, %302, %c0_100, %c0_101] : memref<1x4x16x16xf32, #tpu.memory_space<vmem>>, vector<1x1x16x16xf32>
    %304 = vector.shape_cast %303 : vector<1x1x16x16xf32> to vector<16x16xf32>
    %305 = vector.shape_cast %301 : vector<16x16xf32> to vector<1x1x16x16xf32>
    tpu.vector_store %arg5[%c0_99, %302, %c0_100, %c0_101], %305 {strides = array<i32>} : memref<1x4x16x16xf32, #tpu.memory_space<vmem>>, vector<1x1x16x16xf32>,
    %c3_i32_102 = arith.constant 3 : i32
    %c4_i32_103 = arith.constant 4 : i32
    %306 = arith.muli %arg0, %c4_i32_103 : i32
    %307 = arith.addi %306, %c3_i32_102 : i32
    %c0_104 = arith.constant 0 : index
    %308 = arith.index_cast %c3_i32_102 : i32 to index
    %c0_105 = arith.constant 0 : index
    %c0_106 = arith.constant 0 : index
    %309 = vector.load %arg4[%c0_104, %308, %c0_105, %c0_106] : memref<1x4x16x16xf32, #tpu.memory_space<vmem>>, vector<1x1x16x16xf32>
    %310 = vector.shape_cast %309 : vector<1x1x16x16xf32> to vector<16x16xf32>
    %cst_107 = arith.constant 0.000000e+00 : f32
    %311 = vector.broadcast %cst_107 : f32 to vector<1x16xf32>
    %cst_108 = arith.constant 0.000000e+00 : f32
    %312 = vector.broadcast %cst_108 : f32 to vector<16x1xf32>
    %313 = vector.extract_strided_slice %310 {offsets = [0, 0], sizes = [15, 16], strides = [1, 1]} : vector<16x16xf32> to vector<15x16xf32>
    %314 = tpu.concatenate %311, %313 in 0 : vector<1x16xf32>, vector<15x16xf32> -> vector<16x16xf32>
    %315 = vector.extract_strided_slice %310 {offsets = [1, 0], sizes = [15, 16], strides = [1, 1]} : vector<16x16xf32> to vector<15x16xf32>
    %316 = tpu.concatenate %315, %311 in 0 : vector<15x16xf32>, vector<1x16xf32> -> vector<16x16xf32>
    %317 = arith.index_cast %307 : i32 to index
    %318 = memref.load %arg3[%317] : memref<4xf32, #tpu.memory_space<smem>>
    %319 = vector.broadcast %318 : f32 to vector<16x16xf32>
    %320 = vector.extract_strided_slice %314 {offsets = [0, 0], sizes = [16, 15], strides = [1, 1]} : vector<16x16xf32> to vector<16x15xf32>
    %321 = tpu.concatenate %312, %320 in 1 : vector<16x1xf32>, vector<16x15xf32> -> vector<16x16xf32>
    %322 = vector.extract_strided_slice %314 {offsets = [0, 1], sizes = [16, 15], strides = [1, 1]} : vector<16x16xf32> to vector<16x15xf32>
    %323 = tpu.concatenate %322, %312 in 1 : vector<16x15xf32>, vector<16x1xf32> -> vector<16x16xf32>
    %c9_i32_109 = arith.constant 9 : i32
    %324 = arith.muli %307, %c9_i32_109 : i32
    %c0_i32_110 = arith.constant 0 : i32
    %325 = arith.addi %324, %c0_i32_110 : i32
    %c0_i32_111 = arith.constant 0 : i32
    %326 = arith.addi %325, %c0_i32_111 : i32
    %327 = arith.index_cast %326 : i32 to index
    %328 = memref.load %arg2[%327] : memref<36xf32, #tpu.memory_space<smem>>
    %329 = vector.broadcast %328 : f32 to vector<16x16xf32>
    %330 = arith.mulf %321, %329 : vector<16x16xf32>
    %331 = arith.addf %319, %330 : vector<16x16xf32>
    %c9_i32_112 = arith.constant 9 : i32
    %332 = arith.muli %307, %c9_i32_112 : i32
    %c0_i32_113 = arith.constant 0 : i32
    %333 = arith.addi %332, %c0_i32_113 : i32
    %c1_i32_114 = arith.constant 1 : i32
    %334 = arith.addi %333, %c1_i32_114 : i32
    %335 = arith.index_cast %334 : i32 to index
    %336 = memref.load %arg2[%335] : memref<36xf32, #tpu.memory_space<smem>>
    %337 = vector.broadcast %336 : f32 to vector<16x16xf32>
    %338 = arith.mulf %314, %337 : vector<16x16xf32>
    %339 = arith.addf %331, %338 : vector<16x16xf32>
    %c9_i32_115 = arith.constant 9 : i32
    %340 = arith.muli %307, %c9_i32_115 : i32
    %c0_i32_116 = arith.constant 0 : i32
    %341 = arith.addi %340, %c0_i32_116 : i32
    %c2_i32_117 = arith.constant 2 : i32
    %342 = arith.addi %341, %c2_i32_117 : i32
    %343 = arith.index_cast %342 : i32 to index
    %344 = memref.load %arg2[%343] : memref<36xf32, #tpu.memory_space<smem>>
    %345 = vector.broadcast %344 : f32 to vector<16x16xf32>
    %346 = arith.mulf %323, %345 : vector<16x16xf32>
    %347 = arith.addf %339, %346 : vector<16x16xf32>
    %348 = vector.extract_strided_slice %310 {offsets = [0, 0], sizes = [16, 15], strides = [1, 1]} : vector<16x16xf32> to vector<16x15xf32>
    %349 = tpu.concatenate %312, %348 in 1 : vector<16x1xf32>, vector<16x15xf32> -> vector<16x16xf32>
    %350 = vector.extract_strided_slice %310 {offsets = [0, 1], sizes = [16, 15], strides = [1, 1]} : vector<16x16xf32> to vector<16x15xf32>
    %351 = tpu.concatenate %350, %312 in 1 : vector<16x15xf32>, vector<16x1xf32> -> vector<16x16xf32>
    %c9_i32_118 = arith.constant 9 : i32
    %352 = arith.muli %307, %c9_i32_118 : i32
    %c3_i32_119 = arith.constant 3 : i32
    %353 = arith.addi %352, %c3_i32_119 : i32
    %c0_i32_120 = arith.constant 0 : i32
    %354 = arith.addi %353, %c0_i32_120 : i32
    %355 = arith.index_cast %354 : i32 to index
    %356 = memref.load %arg2[%355] : memref<36xf32, #tpu.memory_space<smem>>
    %357 = vector.broadcast %356 : f32 to vector<16x16xf32>
    %358 = arith.mulf %349, %357 : vector<16x16xf32>
    %359 = arith.addf %347, %358 : vector<16x16xf32>
    %c9_i32_121 = arith.constant 9 : i32
    %360 = arith.muli %307, %c9_i32_121 : i32
    %c3_i32_122 = arith.constant 3 : i32
    %361 = arith.addi %360, %c3_i32_122 : i32
    %c1_i32_123 = arith.constant 1 : i32
    %362 = arith.addi %361, %c1_i32_123 : i32
    %363 = arith.index_cast %362 : i32 to index
    %364 = memref.load %arg2[%363] : memref<36xf32, #tpu.memory_space<smem>>
    %365 = vector.broadcast %364 : f32 to vector<16x16xf32>
    %366 = arith.mulf %310, %365 : vector<16x16xf32>
    %367 = arith.addf %359, %366 : vector<16x16xf32>
    %c9_i32_124 = arith.constant 9 : i32
    %368 = arith.muli %307, %c9_i32_124 : i32
    %c3_i32_125 = arith.constant 3 : i32
    %369 = arith.addi %368, %c3_i32_125 : i32
    %c2_i32_126 = arith.constant 2 : i32
    %370 = arith.addi %369, %c2_i32_126 : i32
    %371 = arith.index_cast %370 : i32 to index
    %372 = memref.load %arg2[%371] : memref<36xf32, #tpu.memory_space<smem>>
    %373 = vector.broadcast %372 : f32 to vector<16x16xf32>
    %374 = arith.mulf %351, %373 : vector<16x16xf32>
    %375 = arith.addf %367, %374 : vector<16x16xf32>
    %376 = vector.extract_strided_slice %316 {offsets = [0, 0], sizes = [16, 15], strides = [1, 1]} : vector<16x16xf32> to vector<16x15xf32>
    %377 = tpu.concatenate %312, %376 in 1 : vector<16x1xf32>, vector<16x15xf32> -> vector<16x16xf32>
    %378 = vector.extract_strided_slice %316 {offsets = [0, 1], sizes = [16, 15], strides = [1, 1]} : vector<16x16xf32> to vector<16x15xf32>
    %379 = tpu.concatenate %378, %312 in 1 : vector<16x15xf32>, vector<16x1xf32> -> vector<16x16xf32>
    %c9_i32_127 = arith.constant 9 : i32
    %380 = arith.muli %307, %c9_i32_127 : i32
    %c6_i32_128 = arith.constant 6 : i32
    %381 = arith.addi %380, %c6_i32_128 : i32
    %c0_i32_129 = arith.constant 0 : i32
    %382 = arith.addi %381, %c0_i32_129 : i32
    %383 = arith.index_cast %382 : i32 to index
    %384 = memref.load %arg2[%383] : memref<36xf32, #tpu.memory_space<smem>>
    %385 = vector.broadcast %384 : f32 to vector<16x16xf32>
    %386 = arith.mulf %377, %385 : vector<16x16xf32>
    %387 = arith.addf %375, %386 : vector<16x16xf32>
    %c9_i32_130 = arith.constant 9 : i32
    %388 = arith.muli %307, %c9_i32_130 : i32
    %c6_i32_131 = arith.constant 6 : i32
    %389 = arith.addi %388, %c6_i32_131 : i32
    %c1_i32_132 = arith.constant 1 : i32
    %390 = arith.addi %389, %c1_i32_132 : i32
    %391 = arith.index_cast %390 : i32 to index
    %392 = memref.load %arg2[%391] : memref<36xf32, #tpu.memory_space<smem>>
    %393 = vector.broadcast %392 : f32 to vector<16x16xf32>
    %394 = arith.mulf %316, %393 : vector<16x16xf32>
    %395 = arith.addf %387, %394 : vector<16x16xf32>
    %c9_i32_133 = arith.constant 9 : i32
    %396 = arith.muli %307, %c9_i32_133 : i32
    %c6_i32_134 = arith.constant 6 : i32
    %397 = arith.addi %396, %c6_i32_134 : i32
    %c2_i32_135 = arith.constant 2 : i32
    %398 = arith.addi %397, %c2_i32_135 : i32
    %399 = arith.index_cast %398 : i32 to index
    %400 = memref.load %arg2[%399] : memref<36xf32, #tpu.memory_space<smem>>
    %401 = vector.broadcast %400 : f32 to vector<16x16xf32>
    %402 = arith.mulf %379, %401 : vector<16x16xf32>
    %403 = arith.addf %395, %402 : vector<16x16xf32>
    %c0_136 = arith.constant 0 : index
    %404 = arith.index_cast %c3_i32_102 : i32 to index
    %c0_137 = arith.constant 0 : index
    %c0_138 = arith.constant 0 : index
    %405 = vector.load %arg5[%c0_136, %404, %c0_137, %c0_138] : memref<1x4x16x16xf32, #tpu.memory_space<vmem>>, vector<1x1x16x16xf32>
    %406 = vector.shape_cast %405 : vector<1x1x16x16xf32> to vector<16x16xf32>
    %407 = vector.shape_cast %403 : vector<16x16xf32> to vector<1x1x16x16xf32>
    tpu.vector_store %arg5[%c0_136, %404, %c0_137, %c0_138], %407 {strides = array<i32>} : memref<1x4x16x16xf32, #tpu.memory_space<vmem>>, vector<1x1x16x16xf32>,
    %c4_i32_139 = arith.constant 4 : i32
    return
  }
  func.func @transform_0(%arg0: i32, %arg1: i32, %arg2: memref<36xf32, #tpu.memory_space<smem>>, %arg3: memref<4xf32, #tpu.memory_space<smem>>) -> (i32, i32, i32, i32) {
    %c0_i32 = arith.constant 0 : i32
    %c0_i32_0 = arith.constant 0 : i32
    %c0_i32_1 = arith.constant 0 : i32
    return %arg1, %arg0, %c0_i32, %c0_i32_0 : i32, i32, i32, i32
  }
  func.func @transform_1(%arg0: i32, %arg1: i32, %arg2: memref<36xf32, #tpu.memory_space<smem>>, %arg3: memref<4xf32, #tpu.memory_space<smem>>) -> (i32, i32, i32, i32) {
    %c0_i32 = arith.constant 0 : i32
    %c0_i32_0 = arith.constant 0 : i32
    %c0_i32_1 = arith.constant 0 : i32
    return %arg1, %arg0, %c0_i32, %c0_i32_0 : i32, i32, i32, i32
  }
}

</mosaic_0001>

<bundles_post_ra>
// kernel: tpu_custom_call.1
= control target key start
LH: loop header
LB: loop body
LE: loop exit
PB: predicated region body
PF: predicated region fallthrough
CT: control target
= control target key end

     0   :  { %s1103_s18 = smov [#allocation3]   ;;  %s1104_s19 = smov [#allocation4]   ;;  %s1679_s0 = inlined_call_operand.hbm [shape: f32[36], index: 0, kind: input, shape index: {}]   ;;  %s1680_s2 = inlined_call_operand.hbm [shape: f32[2,4,16,16], index: 2, kind: input, shape index: {}]   ;;  %s1681_s3 = inlined_call_operand.hbm [shape: f32[2,4,16,16], index: 3, kind: output, shape index: {}]   ;;  %s1682_s1 = inlined_call_operand.hbm [shape: f32[4], index: 1, kind: input, shape index: {}]  }
   0x1   :  { %s9_s14 = sshll.u32 %s1679_s0, 4  ;;  %s14_s17 = sshll.u32 %s1682_s1, 4  ;;  %s10_s14 = int_to_ptr.hbm [resolvable:$true] %s9_s14  ;;  %s15_s17 = int_to_ptr.hbm [resolvable:$true] %s14_s17 }
   0x2   :  { %12 = dma.hbm_to_smem %s10_s14, 16, %s1103_s18, [#allocation2] }
   0x3   :  { %17 = dma.hbm_to_smem %s15_s17, 16, %s1104_s19, [#allocation2] }
   0x4   :  { %1069 = dma.done.wait [#allocation2], 32 }
   0x5   :  { %1070 = vsyncadd [#allocation2], 4294967264 }
   0x6   :  { %20 = sfence }
   0x7   :  { %21 = vsyncpa [#allocation6], 0 }
   0x8   :  { %23 = vsyncpa [#allocation6 + $0x1], 0 }
   0x9   :  { %24 = vsyncpa [#allocation7], 0 }
   0xa   :  { %26 = vsyncpa [#allocation7 + $0x1], 0  ;;  %s1137_s20 = smov 0   ;;  %s1139_s0 = smov 0  }
   0xb   :  { %s1141_s21 = smov 0   ;;  %s1143_s1 = smov 0  }
   0xc   :  { %s1145_s22 = smov 0   ;;  %s1147_s23 = smov 0  }
   0xd LB: > { %s826_s24 = sadd.s32 4294967295, %s1101_s23   ;;  %s827_s25 = sadd.s32 4294967294, %s1101_s23   ;;  %s1101_s23 = sphi %s1147_s23, %s32_s23   ;;  %s1097_s22 = sphi %s1145_s22, %s1691_s22   ;;  %s1093_s1 = sphi %s1143_s1, %s1690_s1   ;;  %s1089_s21 = sphi %s1141_s21, %s1689_s21   ;;  %s1085_s0 = sphi %s1139_s0, %s1688_s0   ;;  %s1081_s20 = sphi %s1137_s20, %s1687_s20  }
   0xe   : > { %s41_s26 = sadd.s32 1, %s1097_s22  ;;  %s53_s27 = sadd.s32 1, %s1089_s21 }
   0xf   : > { %p42_p0 = scmp.ge.s32.totalorder %s41_s26, 2  ;;  %p60_p1 = scmp.ne.s32.totalorder %s1089_s21, %s1085_s0 }
  0x10   : > { %p61_p2 = scmp.eq.s32.totalorder %s1101_s23, 0  ;;  %p66_p3 = scmp.ne.s32.totalorder %s1085_s0, %s1081_s20 }
  0x11   : > { %s1693_s26 = smov (%p42_p0, %s41_s26), 0  ;;  %p67_p5 = scmp.eq.s32.totalorder %s826_s24, 0 }
  0x12   : > { %p1178_p4 = por %p61_p2, %p60_p1  ;;  %s48_s29 = ssub.s32 %s1097_s22, %s1693_s26 }
  0x13   : > { %p92_p6 = scmp.eq.s32.totalorder %s826_s24, 1  ;;  %p51_p7 = scmp.eq.s32.totalorder %s48_s29, 0 }
  0x14   : > { %p1184_p8 = por %p67_p5, %p66_p3  ;;  %p98_p10 = scmp.eq.s32.totalorder %s827_s25, 1 }
  0x15   : > { %p1188_p9 = por %p92_p6, %p60_p1  ;;  %p829_p12 = scmp.ge.s32.totalorder %s1101_s23, 2 }
  0x16   : > { %s1193_s5 = scalar_select %p51_p7, %s1089_s21, %s53_s27  }
  0x17   : > { %p1195_p11 = por %p98_p10, %p66_p3  ;;  %p905_p13 = scmp.lt.s32.totalorder %s1101_s23, 2 }
  0x18   : > { %s118_s7 = sand.u32 1, %s1089_s21   ;;  %s891_s9 = sshll.u32 %s1097_s22, 6 }
  0x19   : > { %s830_s8 = sshll.u32 %s118_s7, 6  ;;  %s130_s12 = scalar_lea.hbm %s1680_s2, %s891_s9 }
  0x1a   : > { %s122_s13 = scalar_lea.vmem [#allocation5], %s830_s8  ;;  %s131_s15 = sshll.u32 %s130_s12, 4  ;;  %s132_s15 = int_to_ptr.hbm [resolvable:$true] %s131_s15 }
  0x1b   : > { %s133_s14 = sshll.u32 %s122_s13, 4  ;;  %p898_p0 = pnand %p905_p13, %p1178_p4  ;;  %s134_s14 = int_to_ptr.vmem [resolvable:$true] %s133_s14 }
  0x1c   : > { %p833_p1 = scmp.ge.s32.totalorder %s1101_s23, 1  ;;  %s119_s16 = scalar_lea.sflag [#allocation6], %s118_s7 }
  0x1d   : > { %s1105_s17 = smov 128   ;;  %s1106_s18 = smov 8  }
  0x1e   : > { %900 = dma.hbm_to_vmem [thread:$0]  (!%p898_p0), %s132_s15, 1024, %s134_s14, %s119_s16, %s1105_s17, %s1105_s17, %s1106_s18  }
  0x1f   : > { %p141_p2 = scmp.lt.s32.totalorder %s1101_s23, 3 }
  0x21   : > { %p142_p3 = pnand %p833_p1, %p141_p2 }
  0x22   : > { %s1211_s19 = sand.u32 (!%p142_p3), 1, %s1085_s0  }
  0x23   : > { %145 = sbr.rel (%p142_p3) target bundleno = 290 (0x122), region = 24  ;;  %s834_s24 = sshll.u32 (!%p142_p3), %s1211_s19, 6 }
  0x24   : > { %s148_s25 = scalar_lea.sflag (!%p142_p3), [#allocation6], %s1211_s19  ;;  %s1217_s27 = scalar_lea.vmem (!%p142_p3), [#allocation5], %s834_s24 }
  0x28   : > { %1072 = dma.done.wait (%p1184_p8), %s148_s25, 1024  }
  0x29   : > { %1074 = vsyncadd (%p1184_p8), %s148_s25, 4294966272  ;;  %v1224_v0 = vld [vmem:[%s1217_s27] sm:$0xff]  ;;  %vm178_vm0 = vcmask 1040384   ;;  %s1107_s28 = smov 1   ;;  %v1230_v2 = vld [vmem:[%s1217_s27 + $0x8] sm:$0xff]  ;;  %s1108_s29 = smov 127  }
  0x2a   : > { %v179_v1 = vrot.slane %v1224_v0, 7  ;;  %234 = vrot.lane.b32.xlu2 %v1224_v0, %s1107_s28  ;;  %v180_v4 = vrot.slane %v1230_v2, 7  ;;  %v186_v6 = vrot.slane %v1224_v0, 1  ;;  %v187_v7 = vrot.slane %v1230_v2, 1  ;;  %v1264_v10 = vld [vmem:[%s1217_s27 + $0x10] sm:$0xff]  ;;  %v1269_v11 = vld [vmem:[%s1217_s27 + $0x18] sm:$0xff] }
  0x2b   : > { %vm185_vm1 = vcmask 1046528   ;;  %v318_v12 = vrot.slane %v1264_v10, 7  ;;  %v319_v13 = vrot.slane %v1269_v11, 7  ;;  %v324_v16 = vrot.slane %v1264_v10, 1  ;;  %v1310_v20 = vld [vmem:[%s1217_s27 + $0x20] sm:$0xff]  ;;  %v1315_v21 = vld [vmem:[%s1217_s27 + $0x28] sm:$0xff] }
  0x2c   : > { %v1233_v3 = vsel %vm178_vm0, 0.0, %v179_v1  ;;  %v1241_v5 = vsel %vm178_vm0, %v179_v1, %v180_v4  ;;  %v1252_v8 = vsel %vm185_vm1, %v186_v6, %v187_v7  ;;  %v1261_v9 = vsel %vm185_vm1, %v187_v7, 0.0  ;;  %v1332_v26 = vld [vmem:[%s1217_s27 + $0x38] sm:$0xff]  ;;  %v1335_v27 = vld [vmem:[%s1217_s27 + $0x30] sm:$0xff]  ;;  %s1385_s30 = sld [smem:[#allocation3 + $0x1]]  ;;  %s1477_s27 = scalar_lea.vmem [#allocation8], %s834_s24 }
  0x2d   : > { %204 = vrot.lane.b32.xlu1 %v1233_v3, %s1108_s29  ;;  %195 = vrot.lane.b32.xlu0 %v1233_v3, %s1107_s28  ;;  %v1278_v14 = vsel %vm178_vm0, 0.0, %v318_v12  ;;  %v1281_v15 = vsel %vm178_vm0, %v318_v12, %v319_v13  ;;  %v325_v17 = vrot.slane %v1269_v11, 1  ;;  %v454_v22 = vrot.slane %v1310_v20, 7  ;;  %s1393_s7 = sld [smem:[#allocation3]] }
  0x2e   : > { %v455_v23 = vrot.slane %v1315_v21, 7  ;;  %v591_v28 = vrot.slane %v1332_v26, 7  ;;  %v590_v29 = vrot.slane %v1335_v27, 7  ;;  %v460_v34 = vrot.slane %v1310_v20, 1  ;;  %s1395_s8 = sld [smem:[#allocation4]] }
  0x2f   : > { %v1298_v18 = vsel %vm185_vm1, %v324_v16, %v325_v17  ;;  %v1307_v19 = vsel %vm185_vm1, %v325_v17, 0.0  ;;  %v1324_v24 = vsel %vm178_vm0, 0.0, %v454_v22  ;;  %v461_v35 = vrot.slane %v1315_v21, 1  ;;  %s1405_s9 = sld [smem:[#allocation3 + $0x2]] }
  0x30   : > { %v1327_v25 = vsel %vm178_vm0, %v454_v22, %v455_v23  ;;  %v1344_v30 = vsel %vm178_vm0, %v590_v29, %v591_v28  ;;  %v1347_v31 = vsel %vm178_vm0, 0.0, %v590_v29  ;;  %v597_v39 = vrot.slane %v1332_v26, 1  ;;  %s1415_s10 = sld [smem:[#allocation3 + $0x3]] }
  0x31   : > { %v1376_v36 = vsel %vm185_vm1, %v461_v35, 0.0  ;;  %v1379_v37 = vsel %vm185_vm1, %v460_v34, %v461_v35  ;;  %v596_v40 = vrot.slane %v1335_v27, 1  ;;  %vm201_vm2 = vcmask 7168   ;;  %s1420_s11 = sld [smem:[#allocation3 + $0x4]] }
  0x32   : > { %236 = vrot.lane.b32.xlu2 %v1230_v2, %s1107_s28  ;;  %v1398_v41 = vsel %vm185_vm1, %v597_v39, 0.0  ;;  %v222_v44 = vstv %s1385_s30  ;;  %vm210_vm3 = vcmask 121856   ;;  %s1432_s12 = sld [smem:[#allocation3 + $0x5]]  ;;  %vm309_vm4 = vcmask 130048  }
  0x33   : > { %v1401_v42 = vsel %vm185_vm1, %v596_v40, %v597_v39  ;;  %v215_v45 = vstv %s1393_s7  ;;  %v223_v50 = vmul.f32 %v222_v44, %v1233_v3  ;;  %s1434_s13 = sld [smem:[#allocation3 + $0x7]]  ;;  %v224_v63 = vmul.f32 %v222_v44, %v1241_v5 }
  0x34   : > { %v193_v48 = vstv %s1395_s8  ;;  %s1438_s14 = sld [smem:[#allocation3 + $0x6]] }
  0x35   : > { %206 = vrot.lane.b32.xlu1 %v1241_v5, %s1108_s29  ;;  %197 = vrot.lane.b32.xlu0 %v1241_v5, %s1107_s28  ;;  %v229_v53 = vstv %s1405_s9  ;;  %s1448_s15 = sld [smem:[#allocation3 + $0x8]] }
  0x36   : > { %v252_v60 = vstv %s1415_s10  ;;  %s1460_s16 = sld [smem:[#allocation3 + $0x9]] }
  0x37   : > { %v259_v6 = vstv %s1420_s11  ;;  %s1464_s17 = sld [smem:[#allocation3 + $0xa]] }
  0x38   : > { %v260_v28 = vmul.f32 %v259_v6, %v1224_v0  ;;  %v266_v5 = vstv %s1432_s12  ;;  %s1468_s18 = sld [smem:[#allocation4 + $0x1]] }
  0x39   : > { %v297_v39 = vstv %s1434_s13  ;;  %s1473_s25 = sld [smem:[#allocation3 + $0xb]] }
  0x3a   : > { %272 = vrot.lane.b32.xlu2 %v1252_v8, %s1107_s28  ;;  %v290_v40 = vstv %s1438_s14  ;;  %s1492_s24 = sld [smem:[#allocation3 + $0xd]] }
  0x3b   : > { %s1501_s30 = sld [smem:[#allocation3 + $0x10]] }
  0x3c   : > { %s1503_s7 = sld [smem:[#allocation3 + $0xf]] }
  0x3d   : > { %244 = vrot.lane.b32.xlu1 %v1230_v2, %s1108_s29  ;;  %242 = vrot.lane.b32.xlu0 %v1224_v0, %s1108_s29  ;;  %s1514_s8 = sld [smem:[#allocation3 + $0x11]] }
  0x3e   : > { %s861_s9 = sld [smem:[#allocation3 + $0x12]] }
  0x3f   : > { %s862_s10 = sld [smem:[#allocation3 + $0x13]] }
  0x40   : > { %s860_s11 = sld [smem:[#allocation4 + $0x2]] }
  0x41   : > { %s1539_s12 = sld [smem:[#allocation3 + $0x14]] }
  0x42   : > { %282 = vrot.lane.b32.xlu2 %v1261_v9, %s1108_s29  ;;  %s1542_s13 = sld [smem:[#allocation3 + $0x1c]] }
  0x43   : > { %s1545_s14 = sld [smem:[#allocation3 + $0x15]] }
  0x45   : > { %280 = vrot.lane.b32.xlu1 %v1252_v8, %s1108_s29  ;;  %274 = vrot.lane.b32.xlu0 %v1261_v9, %s1107_s28 }
  0x4a   : > { %341 = vrot.lane.b32.xlu2 %v1278_v14, %s1108_s29 }
  0x4d   : > { %335 = vrot.lane.b32.xlu1 %v1281_v15, %s1107_s28  ;;  %333 = vrot.lane.b32.xlu0 %v1278_v14, %s1107_s28 }
  0x52   : > { %372 = vrot.lane.b32.xlu2 %v1269_v11, %s1107_s28 }
  0x55   : > { %370 = vrot.lane.b32.xlu1 %v1264_v10, %s1107_s28  ;;  %343 = vrot.lane.b32.xlu0 %v1281_v15, %s1108_s29 }
  0x5a   : > { %408 = vrot.lane.b32.xlu2 %v1298_v18, %s1107_s28 }
  0x5d   : > { %380 = vrot.lane.b32.xlu1 %v1269_v11, %s1108_s29  ;;  %378 = vrot.lane.b32.xlu0 %v1264_v10, %s1108_s29 }
  0x62   : > { %418 = vrot.lane.b32.xlu2 %v1307_v19, %s1108_s29 }
  0x65   : > { %416 = vrot.lane.b32.xlu1 %v1298_v18, %s1108_s29  ;;  %410 = vrot.lane.b32.xlu0 %v1307_v19, %s1107_s28 }
  0x6a   : > { %477 = vrot.lane.b32.xlu2 %v1324_v24, %s1108_s29 }
  0x6d   : > { %471 = vrot.lane.b32.xlu1 %v1327_v25, %s1107_s28  ;;  %469 = vrot.lane.b32.xlu0 %v1324_v24, %s1107_s28 }
  0x72   : > { %607 = vrot.lane.b32.xlu2 %v1344_v30, %s1107_s28 }
  0x75   : > { %605 = vrot.lane.b32.xlu1 %v1347_v31, %s1107_s28  ;;  %479 = vrot.lane.b32.xlu0 %v1327_v25, %s1108_s29 }
  0x7a   : > { %506 = vrot.lane.b32.xlu2 %v1310_v20, %s1107_s28 }
  0x7d   : > { %615 = vrot.lane.b32.xlu1 %v1344_v30, %s1108_s29  ;;  %613 = vrot.lane.b32.xlu0 %v1347_v31, %s1108_s29 }
  0x82   : > { %644 = vrot.lane.b32.xlu2 %v1332_v26, %s1107_s28 }
  0x84   : > { %v235_v32 = vpop.permute.xlu2 %234 }
  0x85   : > { %642 = vrot.lane.b32.xlu1 %v1335_v27, %s1107_s28  ;;  %508 = vrot.lane.b32.xlu0 %v1315_v21, %s1107_s28  ;;  %v240_v61 = vsel %vm201_vm2, 0.0, %v235_v32 }
  0x86   : > { %v253_v7 = vmul.f32 %v252_v60, %v240_v61 }
  0x8a   : > { %650 = vrot.lane.b32.xlu2 %v1335_v27, %s1108_s29 }
  0x8c   : > { %v237_v33 = vpop.permute.xlu2 %236 }
  0x8d   : > { %516 = vrot.lane.b32.xlu1 %v1315_v21, %s1108_s29  ;;  %514 = vrot.lane.b32.xlu0 %v1310_v20, %s1108_s29  ;;  %v241_v13 = vsel %vm201_vm2, 0.0, %v237_v33 }
  0x8e   : > { %v254_v29 = vmul.f32 %v252_v60, %v241_v13  ;;  %v299_v60 = vmul.f32 %v297_v39, %v1261_v9 }
  0x92   : > { %546 = vrot.lane.b32.xlu2 %v1376_v36, %s1107_s28 }
  0x94   : > { %v1383_v38 = vpop.permute.xlu2 %272 }
  0x95   : > { %544 = vrot.lane.b32.xlu1 %v1379_v37, %s1107_s28  ;;  %652 = vrot.lane.b32.xlu0 %v1332_v26, %s1108_s29  ;;  %v278_v33 = vsel %vm201_vm2, 0.0, %v1383_v38 }
  0x9a   : > { %552 = vrot.lane.b32.xlu2 %v1379_v37, %s1108_s29 }
  0x9c   : > { %v1407_v43 = vpop.permute.xlu2 %282 }
  0x9d   : > { %682 = vrot.lane.b32.xlu1 %v1398_v41, %s1107_s28  ;;  %680 = vrot.lane.b32.xlu0 %v1401_v42, %s1107_s28  ;;  %s1481_s28 = sld [smem:[#allocation3 + $0xc]] }
  0x9f   : > { %v205_v46 = vpop.permute.xlu1 %204  ;;  %v196_v47 = vpop.permute.xlu0 %195 }
  0xa0   : > { %v202_v49 = vsel %vm201_vm2, 0.0, %v196_v47  ;;  %v211_v54 = vsel %vm210_vm3, %v205_v46, 0.0 }
  0xa1   : > { %v216_v51 = vmul.f32 %v215_v45, %v202_v49  ;;  %v230_v57 = vmul.f32 %v229_v53, %v211_v54  ;;  %v291_v49 = vmul.f32 %v290_v40, %v278_v33  ;;  %v304_v54 = vstv %s1448_s15  ;;  %s1547_s15 = sld [smem:[#allocation3 + $0x1b]] }
  0xa2   : > { %690 = vrot.lane.b32.xlu2 %v1398_v41, %s1108_s29 }
  0xa3   : > { %v218_v52 = vadd.f32 %v216_v51, %v193_v48  ;;  %v388_v33 = vstv %s1481_s28  ;;  %s1562_s28 = sld [smem:[#allocation3 + $0x18]] }
  0xa4   : > { %v1426_v55 = vpop.permute.xlu2 %341 }
  0xa5   : > { %v225_v56 = vadd.f32 %v223_v50, %v218_v52  ;;  %688 = vrot.lane.b32.xlu1 %v1401_v42, %s1108_s29  ;;  %554 = vrot.lane.b32.xlu0 %v1376_v36, %s1108_s29  ;;  %s1499_s29 = sld [smem:[#allocation3 + $0xe]] }
  0xa7   : > { %v207_v58 = vpop.permute.xlu1 %206  ;;  %v198_v59 = vpop.permute.xlu0 %197  ;;  %v232_v1 = vadd.f32 %v230_v57, %v225_v56 }
  0xa8   : > { %v203_v62 = vsel %vm201_vm2, 0.0, %v198_v59  ;;  %v212_v4 = vsel %vm210_vm3, %v207_v58, 0.0 }
  0xa9   : > { %v217_v3 = vmul.f32 %v215_v45, %v203_v62  ;;  %v231_v17 = vmul.f32 %v229_v53, %v212_v4  ;;  %v255_v23 = vadd.f32 %v253_v7, %v232_v1  ;;  %v261_v45 = vmul.f32 %v259_v6, %v1230_v2 }
  0xaa   : > { %v287_v1 = vsel %vm210_vm3, %v1407_v43, 0.0  ;;  %v351_v7 = vstv %s1460_s16  ;;  %s1551_s16 = sld [smem:[#allocation3 + $0x19]] }
  0xab   : > { %v219_v12 = vadd.f32 %v217_v3, %v193_v48  ;;  %v262_v47 = vadd.f32 %v260_v28, %v255_v23  ;;  %v298_v48 = vmul.f32 %v297_v39, %v1252_v8  ;;  %v306_v6 = vmul.f32 %v304_v54, %v287_v1 }
  0xac   : > { %v1445_v16 = vpop.permute.xlu2 %372  ;;  %v365_v39 = vstv %s1473_s25  ;;  %s1559_s25 = sld [smem:[#allocation3 + $0x17]] }
  0xad   : > { %v226_v22 = vadd.f32 %v224_v63, %v219_v12 }
  0xaf   : > { %v233_v32 = vadd.f32 %v231_v17, %v226_v22  ;;  %v245_v34 = vpop.permute.xlu1 %244  ;;  %v243_v35 = vpop.permute.xlu0 %242  ;;  %v358_v17 = vstv %s1464_s17  ;;  %v331_v22 = vstv %s1468_s18  ;;  %s1553_s17 = sld [smem:[#allocation4 + $0x3]] }
  0xb0   : > { %v248_v44 = vsel %vm210_vm3, %v243_v35, 0.0  ;;  %v249_v51 = vsel %vm210_vm3, %v245_v34, 0.0  ;;  %s1556_s18 = sld [smem:[#allocation3 + $0x16]] }
  0xb1   : > { %v256_v46 = vadd.f32 %v254_v29, %v233_v32  ;;  %v267_v0 = vmul.f32 %v266_v5, %v248_v44  ;;  %v268_v38 = vmul.f32 %v266_v5, %v249_v51  ;;  %v359_v32 = vmul.f32 %v358_v17, %v1278_v14 }
  0xb3   : > { %v269_v50 = vadd.f32 %v267_v0, %v262_v47  ;;  %v263_v52 = vadd.f32 %v261_v45, %v256_v46  ;;  %v360_v0 = vmul.f32 %v358_v17, %v1281_v15  ;;  %v433_v15 = vstv %s1501_s30  ;;  %s1590_s30 = sld [smem:[#allocation3 + $0x1f]] }
  0xb4   : > { %v1462_v56 = vpop.permute.xlu2 %408 }
  0xb5   : > { %v293_v53 = vadd.f32 %v291_v49, %v269_v50  ;;  %v270_v61 = vadd.f32 %v268_v38, %v263_v52  ;;  %v395_v50 = vstv %s1492_s24  ;;  %s1566_s24 = sld [smem:[#allocation3 + $0x1d]] }
  0xb7   : > { %v281_v2 = vpop.permute.xlu1 %280  ;;  %v300_v57 = vadd.f32 %v298_v48, %v293_v53  ;;  %v275_v58 = vpop.permute.xlu0 %274 }
  0xb8   : > { %v286_v8 = vsel %vm210_vm3, %v281_v2, 0.0  ;;  %v279_v59 = vsel %vm201_vm2, 0.0, %v275_v58  ;;  %v396_v2 = vmul.f32 %v1264_v10, %v395_v50  ;;  %v402_v58 = vstv %s1499_s29  ;;  %s1577_s29 = sld [smem:[#allocation3 + $0x1e]] }
  0xb9   : > { %v305_v62 = vmul.f32 %v304_v54, %v286_v8  ;;  %v292_v63 = vmul.f32 %v290_v40, %v279_v59  ;;  %v347_v40 = vsel %vm210_vm3, %v1426_v55, 0.0 }
  0xba   : > { %v366_v48 = vmul.f32 %v365_v39, %v347_v40 }
  0xbb   : > { %v307_v3 = vadd.f32 %v305_v62, %v300_v57  ;;  %v294_v4 = vadd.f32 %v292_v63, %v270_v61  ;;  %v377_v57 = vsel %vm201_vm2, 0.0, %v1445_v16  ;;  %v426_v61 = vstv %s1503_s7  ;;  %s1596_s7 = sld [smem:[#allocation3 + $0x1a]] }
  0xbc   : > { %v1487_v28 = vpop.permute.xlu2 %418  ;;  %v414_v62 = vsel %vm201_vm2, 0.0, %v1462_v56  ;;  %v390_v1 = vmul.f32 %v388_v33, %v377_v57  ;;  %v440_v56 = vstv %s1514_s8  ;;  %v494_v57 = vstv %s862_s10  ;;  %s1602_s8 = sld [smem:[#allocation3 + $0x20]] }
  0xbd   : > { %310 = vst.msk [vmem:[%s1477_s27] sm:$0xff] %vm309_vm4, %v307_v3  ;;  %v301_v9 = vadd.f32 %v299_v60, %v294_v4  ;;  %v434_v4 = vmul.f32 %v433_v15, %v1298_v18  ;;  %v423_v40 = vsel %vm210_vm3, %v1487_v28, 0.0  ;;  %v487_v28 = vstv %s861_s9  ;;  %s1605_s9 = sld [smem:[#allocation3 + $0x22]] }
  0xbe   : > { %s1608_s10 = sld [smem:[#allocation3 + $0x21]] }
  0xbf   : > { %v308_v12 = vadd.f32 %v306_v6, %v301_v9  ;;  %v336_v43 = vpop.permute.xlu1 %335  ;;  %v334_v13 = vpop.permute.xlu0 %333  ;;  %v427_v6 = vmul.f32 %v426_v61, %v414_v62  ;;  %v495_v62 = vmul.f32 %v494_v57, %v1324_v24 }
  0xc0   : > { %v339_v23 = vsel %vm201_vm2, 0.0, %v334_v13  ;;  %v340_v29 = vsel %vm201_vm2, 0.0, %v336_v43 }
  0xc1   : > { %311 = vst.msk [vmem:[%s1477_s27 + $0x8] sm:$0xff] %vm309_vm4, %v308_v12  ;;  %v352_v5 = vmul.f32 %v351_v7, %v339_v23  ;;  %v353_v35 = vmul.f32 %v351_v7, %v340_v29  ;;  %v397_v7 = vmul.f32 %v1269_v11, %v395_v50 }
  0xc3   : > { %v354_v34 = vadd.f32 %v352_v5, %v331_v22  ;;  %v355_v55 = vadd.f32 %v353_v35, %v331_v22 }
  0xc4   : > { %v1509_v51 = vpop.permute.xlu2 %477 }
  0xc5   : > { %v361_v44 = vadd.f32 %v359_v32, %v354_v34  ;;  %v362_v38 = vadd.f32 %v360_v0, %v355_v55  ;;  %v435_v34 = vmul.f32 %v433_v15, %v1307_v19 }
  0xc7   : > { %v371_v45 = vpop.permute.xlu1 %370  ;;  %v344_v46 = vpop.permute.xlu0 %343  ;;  %v368_v52 = vadd.f32 %v366_v48, %v361_v44 }
  0xc8   : > { %v376_v14 = vsel %vm201_vm2, 0.0, %v371_v45  ;;  %v348_v47 = vsel %vm210_vm3, %v344_v46, 0.0  ;;  %v442_v45 = vmul.f32 %v440_v56, %v423_v40  ;;  %v538_v40 = vstv %s1559_s25 }
  0xc9   : > { %v389_v49 = vmul.f32 %v388_v33, %v376_v14  ;;  %v367_v53 = vmul.f32 %v365_v39, %v348_v47 }
  0xcb   : > { %v391_v54 = vadd.f32 %v389_v49, %v368_v52  ;;  %v369_v8 = vadd.f32 %v367_v53, %v362_v38 }
  0xcc   : > { %v1525_v43 = vpop.permute.xlu2 %607 }
  0xcd   : > { %v398_v3 = vadd.f32 %v396_v2, %v391_v54  ;;  %v392_v9 = vadd.f32 %v390_v1, %v369_v8 }
  0xcf   : > { %v381_v59 = vpop.permute.xlu1 %380  ;;  %v379_v60 = vpop.permute.xlu0 %378  ;;  %v399_v22 = vadd.f32 %v397_v7, %v392_v9  ;;  %v612_v9 = vsel %vm201_vm2, 0.0, %v1525_v43 }
  0xd0   : > { %v384_v63 = vsel %vm210_vm3, %v379_v60, 0.0  ;;  %v385_v16 = vsel %vm210_vm3, %v381_v59, 0.0  ;;  %v496_v59 = vmul.f32 %v494_v57, %v1327_v25 }
  0xd1   : > { %v403_v10 = vmul.f32 %v402_v58, %v384_v63  ;;  %v404_v13 = vmul.f32 %v402_v58, %v385_v16  ;;  %v467_v58 = vstv %s860_s11  ;;  %v630_v63 = vstv %s1542_s13  ;;  %s1614_s11 = sld [smem:[#allocation3 + $0x23]] }
  0xd2   : > { %v524_v16 = vstv %s1545_s14  ;;  %v631_v24 = vmul.f32 %v630_v63, %v1347_v31 }
  0xd3   : > { %v405_v12 = vadd.f32 %v403_v10, %v398_v3  ;;  %v406_v35 = vadd.f32 %v404_v13, %v399_v22  ;;  %v483_v13 = vsel %vm210_vm3, %v1509_v51, 0.0  ;;  %v569_v22 = vstv %s1551_s16 }
  0xd4   : > { %v507_v14 = vpop.permute.xlu2 %506 }
  0xd5   : > { %v429_v17 = vadd.f32 %v427_v6, %v405_v12  ;;  %v623_v6 = vstv %s1547_s15  ;;  %v512_v31 = vsel %vm201_vm2, 0.0, %v507_v14 }
  0xd7   : > { %v417_v23 = vpop.permute.xlu1 %416  ;;  %v436_v5 = vadd.f32 %v434_v4, %v429_v17  ;;  %v411_v29 = vpop.permute.xlu0 %410 }
  0xd8   : > { %v422_v32 = vsel %vm210_vm3, %v417_v23, 0.0  ;;  %v415_v18 = vsel %vm201_vm2, 0.0, %v411_v29  ;;  %v603_v29 = vstv %s1553_s17  ;;  %s721_s17 = scalar_lea.sflag [#allocation7], %s1211_s19 }
  0xd9   : > { %v441_v11 = vmul.f32 %v440_v56, %v422_v32  ;;  %v428_v39 = vmul.f32 %v426_v61, %v415_v18  ;;  %v501_v61 = vstv %s1539_s12  ;;  %v632_v56 = vmul.f32 %v630_v63, %v1344_v30  ;;  %s892_s12 = sshll.u32 %s1093_s1, 6  ;;  %s736_s1 = sshll.u32 %s1477_s27, 4  ;;  %s737_s1 = int_to_ptr.vmem [resolvable:$true] %s736_s1 }
  0xda   : > { %v625_v32 = vmul.f32 %v623_v6, %v612_v9  ;;  %v531_v18 = vstv %s1556_s18  ;;  %s735_s15 = scalar_lea.hbm %s1681_s3, %s892_s12 }
  0xdb   : > { %v443_v33 = vadd.f32 %v441_v11, %v436_v5  ;;  %v430_v44 = vadd.f32 %v428_v39, %v406_v35  ;;  %v533_v11 = vmul.f32 %v1315_v21, %v531_v18  ;;  %v571_v39 = vmul.f32 %v569_v22, %v1376_v36  ;;  %s738_s16 = sshll.u32 %s735_s15, 4  ;;  %s739_s16 = int_to_ptr.hbm [resolvable:$true] %s738_s16 }
  0xdc   : > { %v1537_v19 = vpop.permute.xlu2 %644  ;;  %v532_v14 = vmul.f32 %v1310_v20, %v531_v18  ;;  %s1031_s18 = sshra.s32 %s739_s16, 4  ;;  %s1032_s18 = int_to_ptr.hbm [resolvable:$true] %s1031_s18 }
  0xdd   : > { %856 = vst.msk [vmem:[%s1477_s27 + $0x10] sm:$0xff] %vm309_vm4, %v443_v33  ;;  %v437_v46 = vadd.f32 %v435_v34, %v430_v44  ;;  %v502_v34 = vmul.f32 %v501_v61, %v483_v13  ;;  %v562_v33 = vstv %s1562_s28  ;;  %v649_v57 = vsel %vm201_vm2, 0.0, %v1537_v19  ;;  %s1033_s25 = scalar_lea.hbm %s1032_s18, 64  ;;  %p1038_p7 = scmp.lt.s32.totalorder %s1032_s18, %s1681_s3 }
  0xde   : > { %p1034_p4 = scmp.ne.s32.totalorder %s1032_s18, %s1033_s25 }
  0xdf   : > { %v444_v47 = vadd.f32 %v442_v45, %v437_v46  ;;  %v472_v0 = vpop.permute.xlu1 %471  ;;  %v470_v48 = vpop.permute.xlu0 %469  ;;  %v525_v45 = vmul.f32 %v524_v16, %v512_v31  ;;  %v637_v46 = vstv %s1566_s24 }
  0xe0   : > { %v476_v50 = vsel %vm201_vm2, 0.0, %v472_v0  ;;  %v475_v54 = vsel %vm201_vm2, 0.0, %v470_v48  ;;  %v627_v48 = vadd.f32 %v625_v32, %v603_v29  ;;  %p1035_p5 = pnand %p1034_p4, %p1188_p9 }
  0xe1   : > { %857 = vst.msk [vmem:[%s1477_s27 + $0x18] sm:$0xff] %vm309_vm4, %v444_v47  ;;  %v489_v38 = vmul.f32 %v487_v28, %v476_v50  ;;  %v488_v15 = vmul.f32 %v487_v28, %v475_v54 }
  0xe2   : > { %p1036_p6 = pneg %p1035_p5 }
  0xe3   : > { %v491_v60 = vadd.f32 %v489_v38, %v467_v58  ;;  %v490_v1 = vadd.f32 %v488_v15, %v467_v58  ;;  %v660_v38 = vstv %s1577_s29  ;;  %s1037_s29 = scalar_lea.hbm %s1681_s3, 128 }
  0xe4   : > { %v1549_v2 = vpop.permute.xlu2 %650  ;;  %p1039_p8 = scmp.lt.s32.totalorder %s1037_s29, %s1033_s25 }
  0xe5   : > { %v498_v7 = vadd.f32 %v496_v59, %v491_v60  ;;  %v497_v23 = vadd.f32 %v495_v62, %v490_v1  ;;  %v634_v60 = vadd.f32 %v632_v56, %v627_v48  ;;  %v570_v1 = vmul.f32 %v569_v22, %v1379_v37 }
  0xe6   : > { %p1040_p10 = por %p1039_p8, %p1038_p7 }
  0xe7   : > { %v606_v55 = vpop.permute.xlu1 %605  ;;  %v480_v49 = vpop.permute.xlu0 %479  ;;  %v504_v44 = vadd.f32 %v502_v34, %v497_v23  ;;  %v674_v23 = vstv %s1602_s8  ;;  %v705_v34 = vstv %s1605_s9 }
  0xe8   : > { %v484_v8 = vsel %vm210_vm3, %v480_v49, 0.0  ;;  %v611_v17 = vsel %vm201_vm2, 0.0, %v606_v55  ;;  %p1041_p13 = pnand %p1040_p10, %p1036_p6 }
  0xe9   : > { %v503_v3 = vmul.f32 %v501_v61, %v484_v8  ;;  %v624_v51 = vmul.f32 %v623_v6, %v611_v17  ;;  %v527_v58 = vadd.f32 %v525_v45, %v504_v44 }
  0xeb   : > { %v505_v5 = vadd.f32 %v503_v3, %v498_v7  ;;  %v626_v49 = vadd.f32 %v624_v51, %v603_v29  ;;  %v662_v3 = vmul.f32 %v660_v38, %v649_v57  ;;  %v667_v7 = vstv %s1590_s30 }
  0xec   : > { %v547_v43 = vpop.permute.xlu2 %546  ;;  %v668_v17 = vmul.f32 %v1335_v27, %v667_v7  ;;  %v669_v31 = vmul.f32 %v1332_v26, %v667_v7 }
  0xed   : > { %v551_v30 = vsel %vm201_vm2, 0.0, %v547_v43  ;;  %v633_v61 = vadd.f32 %v631_v24, %v626_v49  ;;  %v576_v24 = vstv %s1596_s7 }
  0xee   : > { %v564_v54 = vmul.f32 %v562_v33, %v551_v30 }
  0xef   : > { %v616_v52 = vpop.permute.xlu1 %615  ;;  %v614_v53 = vpop.permute.xlu0 %613 }
  0xf0   : > { %v620_v55 = vsel %vm210_vm3, %v616_v52, 0.0  ;;  %v619_v21 = vsel %vm210_vm3, %v614_v53, 0.0 }
  0xf1   : > { %v639_v53 = vmul.f32 %v637_v46, %v620_v55  ;;  %v638_v15 = vmul.f32 %v637_v46, %v619_v21 }
  0xf4   : > { %v553_v59 = vpop.permute.xlu2 %552 }
  0xf5   : > { %v558_v13 = vsel %vm210_vm3, %v553_v59, 0.0 }
  0xf6   : > { %v577_v18 = vmul.f32 %v576_v24, %v558_v13 }
  0xf7   : > { %v643_v10 = vpop.permute.xlu1 %642  ;;  %v509_v4 = vpop.permute.xlu0 %508 }
  0xf8   : > { %v513_v25 = vsel %vm201_vm2, 0.0, %v509_v4  ;;  %v648_v20 = vsel %vm201_vm2, 0.0, %v643_v10  ;;  %v641_v10 = vadd.f32 %v639_v53, %v634_v60  ;;  %v640_v4 = vadd.f32 %v638_v15, %v633_v61 }
  0xf9   : > { %v526_v12 = vmul.f32 %v524_v16, %v513_v25  ;;  %v661_v62 = vmul.f32 %v660_v38, %v648_v20  ;;  %v534_v16 = vadd.f32 %v532_v14, %v527_v58  ;;  %v712_v14 = vstv %s1614_s11 }
  0xfa   : > { %v664_v29 = vadd.f32 %v662_v3, %v641_v10 }
  0xfb   : > { %v528_v35 = vadd.f32 %v526_v12, %v505_v5  ;;  %v663_v37 = vadd.f32 %v661_v62, %v640_v4  ;;  %v656_v5 = vsel %vm210_vm3, %v1549_v2, 0.0  ;;  %v706_v2 = vmul.f32 %v705_v34, %v1401_v42 }
  0xfc   : > { %v671_v30 = vadd.f32 %v669_v31, %v664_v29 }
  0xfd   : > { %v535_v28 = vadd.f32 %v533_v11, %v528_v35  ;;  %v670_v51 = vadd.f32 %v668_v17, %v663_v37  ;;  %v675_v35 = vmul.f32 %v674_v23, %v656_v5 }
  0xff   : > { %v517_v47 = vpop.permute.xlu1 %516  ;;  %v515_v0 = vpop.permute.xlu0 %514  ;;  %v677_v48 = vadd.f32 %v675_v35, %v670_v51 }
 0x100   : > { %v521_v36 = vsel %vm210_vm3, %v517_v47, 0.0  ;;  %v520_v52 = vsel %vm210_vm3, %v515_v0, 0.0 }
 0x101   : > { %v540_v50 = vmul.f32 %v538_v40, %v521_v36  ;;  %v539_v63 = vmul.f32 %v538_v40, %v520_v52  ;;  %v698_v40 = vstv %s1608_s10 }
 0x103   : > { %v542_v8 = vadd.f32 %v540_v50, %v535_v28  ;;  %v541_v56 = vadd.f32 %v539_v63, %v534_v16 }
 0x105   : > { %v566_v19 = vadd.f32 %v564_v54, %v542_v8 }
 0x107   : > { %v545_v25 = vpop.permute.xlu1 %544  ;;  %v653_v6 = vpop.permute.xlu0 %652  ;;  %v573_v9 = vadd.f32 %v571_v39, %v566_v19 }
 0x108   : > { %v550_v12 = vsel %vm201_vm2, 0.0, %v545_v25  ;;  %v657_v43 = vsel %vm210_vm3, %v653_v6, 0.0  ;;  %v691_v39 = vpop.permute.xlu2 %690 }
 0x109   : > { %v563_v22 = vmul.f32 %v562_v33, %v550_v12  ;;  %v676_v11 = vmul.f32 %v674_v23, %v657_v43  ;;  %v707_v33 = vmul.f32 %v705_v34, %v1398_v41  ;;  %v695_v0 = vsel %vm210_vm3, %v691_v39, 0.0 }
 0x10a   : > { %v714_v49 = vmul.f32 %v712_v14, %v695_v0 }
 0x10b   : > { %v565_v32 = vadd.f32 %v563_v22, %v541_v56  ;;  %v678_v55 = vadd.f32 %v676_v11, %v671_v30 }
 0x10d   : > { %v572_v27 = vadd.f32 %v570_v1, %v565_v32 }
 0x10f   : > { %v579_v44 = vadd.f32 %v577_v18, %v572_v27  ;;  %v683_v45 = vpop.permute.xlu1 %682  ;;  %v681_v46 = vpop.permute.xlu0 %680 }
 0x110   : > { %v687_v26 = vsel %vm201_vm2, 0.0, %v683_v45  ;;  %v686_v47 = vsel %vm201_vm2, 0.0, %v681_v46 }
 0x111   : > { %870 = vst.msk [vmem:[%s1477_s27 + $0x20] sm:$0xff] %vm309_vm4, %v579_v44  ;;  %v700_v21 = vmul.f32 %v698_v40, %v687_v26  ;;  %v699_v41 = vmul.f32 %v698_v40, %v686_v47 }
 0x113   : > { %v702_v42 = vadd.f32 %v700_v21, %v678_v55  ;;  %v701_v36 = vadd.f32 %v699_v41, %v677_v48 }
 0x115   : > { %v709_v28 = vadd.f32 %v707_v33, %v702_v42  ;;  %v708_v50 = vadd.f32 %v706_v2, %v701_v36 }
 0x117   : > { %v716_v54 = vadd.f32 %v714_v49, %v709_v28  ;;  %v689_v38 = vpop.permute.xlu1 %688  ;;  %v555_v57 = vpop.permute.xlu0 %554 }
 0x118   : > { %v694_v20 = vsel %vm210_vm3, %v689_v38, 0.0  ;;  %v559_v52 = vsel %vm210_vm3, %v555_v57, 0.0 }
 0x119   : > { %885 = vst.msk [vmem:[%s1477_s27 + $0x38] sm:$0xff] %vm309_vm4, %v716_v54  ;;  %v713_v58 = vmul.f32 %v712_v14, %v694_v20  ;;  %v578_v53 = vmul.f32 %v576_v24, %v559_v52 }
 0x11b   : > { %v715_v15 = vadd.f32 %v713_v58, %v708_v50  ;;  %v580_v8 = vadd.f32 %v578_v53, %v573_v9 }
 0x11d   : > { %884 = vst.msk [vmem:[%s1477_s27 + $0x30] sm:$0xff] %vm309_vm4, %v715_v15 }
 0x11e   : > { %871 = vst.msk [vmem:[%s1477_s27 + $0x28] sm:$0xff] %vm309_vm4, %v580_v8 }
 0x11f   : > { %1044 = shalt.err (!%p1041_p13)
}
 0x120   : > { %s1109_s19 = smov 128   ;;  %s1110_s27 = smov 8  }
 0x121   : > { %895 = dma.vmem_to_hbm [thread:$0]  (%p1188_p9), %s737_s1, 1024, %s739_s16, %s721_s17, %s1109_s19, %s1109_s19, %s1110_s27  }
 0x122 PF: > { %s753_s8 = sand.u32 1, %s1081_s20   ;;  %p902_p0 = pnand %p829_p12, %p1195_p11 }
 0x123   : > { %s754_s9 = scalar_lea.sflag [#allocation7], %s753_s8 }
 0x124   : > { %p903_p1 = pneg %p902_p0 }
 0x126   : > { %1076 = dma.done.wait (%p903_p1), %s754_s9, 1024  }
 0x127   : > { %1078 = vsyncadd (%p903_p1), %s754_s9, 4294966272  ;;  %s32_s23 = sadd.s32 1, %s1101_s23   ;;  %s1687_s20 = smov %s1085_s0 }
 0x128   : > { %p29_p2 = scmp.ge.s32.totalorder %s32_s23, 4   ;;  %s1688_s0 = smov %s1089_s21 }
 0x129   : > { %s1689_s21 = smov %s1193_s5  ;;  %s1690_s1 = smov %s1097_s22 }
 0x12a   : > { %s1691_s22 = smov %s1693_s26  ;;  %31 = sbr.rel (!%p29_p2) target bundleno = 13 (0xd), region = 75 }
 0x12f   :  { %760 = vsyncpa [#allocation6], 1 }
 0x130   :  { %762 = vsyncpa [#allocation6 + $0x1], 1 }
 0x131   :  { %763 = vsyncpa [#allocation7], 1 }
 0x132   :  { %765 = vsyncpa [#allocation7 + $0x1], 1 }

</bundles_post_ra>
